<compile_context>
chip_gen: v7x
topology: tpu7x:2x2x1
jax: 0.10.0
libtpu: 0.0.40
codegen_flags: <defaults>
</compile_context>

<pallas_src>
import numpy as np
import jax
import jax.numpy as jnp
from jax.experimental import pallas as pl
from jax.experimental.pallas import tpu as pltpu


# ----------------------------- configuration --------------------------------
B = 2          # batch
L = 64         # sequence length
C = 128        # dim (lane-dense: multiple of 128)
R = 8          # reduction ratio
CR = C // R    # conv1 output channels = 16
EPS = 1e-5     # nn.LayerNorm default eps


# ------------------------------- Pallas kernel -------------------------------
def ea_kernel(x_ref, w1_ref, w2_ref, gb_ref, o_ref):
    # x_ref:  (B, L, C)
    # w1_ref: (C, 3*CR)  columns = [W_left | W_mid | W_right] of the k=3 conv
    # w2_ref: (CR, C)    k=1 conv
    # gb_ref: (2, C)     [gamma ; beta]
    x = x_ref[...]
    x2 = x.reshape(B * L, C)                                     # (128, 128)

    # Conv1d(C -> CR, k=3, pad=1, bias=False): single fused matmul for all taps.
    # h[l] = x[l-1] @ W_left + x[l] @ W_mid + x[l+1] @ W_right   (zero padded)
    h3 = jnp.dot(x2, w1_ref[...], preferred_element_type=jnp.float32)  # (128, 48)
    p = h3[:, 0:CR]            # x[l] @ W_left   -> needed at position l+1
    m = h3[:, CR:2 * CR]       # x[l] @ W_mid    -> stays at position l
    r = h3[:, 2 * CR:3 * CR]   # x[l] @ W_right  -> needed at position l-1

    # Sequence shifts as sublane rolls (XLU) + batch-boundary masks (VPU select).
    row = jax.lax.broadcasted_iota(jnp.int32, (B * L, CR), 0)
    p_shift = jnp.where(row % L == 0,
                        jnp.float32(0.0), pltpu.roll(p, shift=1, axis=0))
    r_shift = jnp.where(row % L == L - 1,
                        jnp.float32(0.0), pltpu.roll(r, shift=B * L - 1, axis=0))

    attn = jax.nn.sigmoid(m + p_shift + r_shift)                 # (128, 16)

    # Conv1d(CR -> C, k=1, bias=False) == plain matmul.
    out = jnp.dot(attn, w2_ref[...], preferred_element_type=jnp.float32)  # (128, 128)

    # Residual + LayerNorm over C.
    y = x2 + out
    mu = jnp.mean(y, axis=-1, keepdims=True)
    yc = y - mu
    var = jnp.mean(yc * yc, axis=-1, keepdims=True)
    yn = yc * jax.lax.rsqrt(var + EPS) * gb_ref[0:1] + gb_ref[1:2]
    o_ref[...] = yn.reshape(B, L, C)


@jax.jit
def external_dependency_attention(x, w1, w2, gamma, beta):
    """x: (B, L, C); w1: (CR, C, 3) torch Conv1d layout; w2: (C, CR, 1)."""
    # Weight re-layout into matmul form (constant-folded/hoisted under jit).
    w1cat = jnp.concatenate(
        [jnp.transpose(w1[:, :, 0]),      # (C, CR)  multiplies x[l-1]
         jnp.transpose(w1[:, :, 1]),      # (C, CR)  multiplies x[l]
         jnp.transpose(w1[:, :, 2])],     # (C, CR)  multiplies x[l+1]
        axis=1)                           # (C, 3*CR)
    w2m = jnp.transpose(w2[:, :, 0])      # (CR, C)
    gb = jnp.stack([gamma, beta], axis=0) # (2, C)

    cost = pl.CostEstimate(
        flops=2 * (B * L) * C * (3 * CR) + 2 * (B * L) * CR * C,
        transcendentals=(B * L) * CR + (B * L),
        bytes_accessed=(2 * B * L * C + C * 3 * CR + CR * C + 2 * C) * 4,
    )

    return pl.pallas_call(
        ea_kernel,
        out_shape=jax.ShapeDtypeStruct((B, L, C), jnp.float32),
        grid=(1,),
        in_specs=[
            pl.BlockSpec((B, L, C), lambda i: (0, 0, 0)),
            pl.BlockSpec((C, 3 * CR), lambda i: (0, 0)),
            pl.BlockSpec((CR, C), lambda i: (0, 0)),
            pl.BlockSpec((2, C), lambda i: (0, 0)),
        ],
        out_specs=pl.BlockSpec((B, L, C), lambda i: (0, 0, 0)),
        compiler_params=pltpu.CompilerParams(
            dimension_semantics=("arbitrary",)),
        cost_estimate=cost,
    )(x, w1cat, w2m, gb)


# ------------------------------- JAX reference --------------------------------
def reference_forward(x, w1, w2, gamma, beta):
    x_t = jnp.transpose(x, (0, 2, 1))                          # (B, C, L)
    a = jax.lax.conv_general_dilated(
        x_t, w1, window_strides=(1,), padding=((1, 1),),
        dimension_numbers=("NCH", "OIH", "NCH"))               # (B, CR, L)
    a = jax.nn.sigmoid(a)
    o = jax.lax.conv_general_dilated(
        a, w2, window_strides=(1,), padding=((0, 0),),
        dimension_numbers=("NCH", "OIH", "NCH"))               # (B, C, L)
    o = jnp.transpose(o, (0, 2, 1))                            # (B, L, C)
    y = x + o
    mu = jnp.mean(y, -1, keepdims=True)
    var = jnp.mean((y - mu) ** 2, -1, keepdims=True)
    return (y - mu) * jax.lax.rsqrt(var + EPS) * gamma + beta


# ---------------------------------- main --------------------------------------
if __name__ == "__main__":
    key = jax.random.PRNGKey(0)
    k_x, k_w1, k_w2, k_g, k_b = jax.random.split(key, 5)

    x = jax.random.normal(k_x, (B, L, C), jnp.float32)
    w1 = 0.05 * jax.random.normal(k_w1, (CR, C, 3), jnp.float32)   # Conv1d(C->CR,k=3)
    w2 = 0.05 * jax.random.normal(k_w2, (C, CR, 1), jnp.float32)   # Conv1d(CR->C,k=1)
    gamma = 1.0 + 0.1 * jax.random.normal(k_g, (C,), jnp.float32)
    beta = 0.1 * jax.random.normal(k_b, (C,), jnp.float32)

    out = external_dependency_attention(x, w1, w2, gamma, beta)
    out = jax.block_until_ready(out)

    ref = jax.block_until_ready(reference_forward(x, w1, w2, gamma, beta))
    np.testing.assert_allclose(np.asarray(out), np.asarray(ref), rtol=1e-4, atol=1e-4)

    print("KERNEL_OK")
</pallas_src>

<mosaic_0001>
module attributes {stable_mosaic.version = 11 : i64} {
  func.func @ea_kernel(%arg0: i32, %arg1: memref<2x64x128xf32, #tpu.memory_space<vmem>>, %arg2: memref<128x48xf32, #tpu.memory_space<vmem>>, %arg3: memref<16x128xf32, #tpu.memory_space<vmem>>, %arg4: memref<2x128xf32, #tpu.memory_space<vmem>>, %arg5: memref<2x64x128xf32, #tpu.memory_space<vmem>>) attributes {dimension_semantics = [#tpu.dimension_semantics<arbitrary>], iteration_bounds = array<i64: 1>, scalar_prefetch = 0 : i64, scratch_operands = 0 : i64, tpu.core_type = #tpu.core_type<tc>, window_params = [{pipeline_mode = #tpu.pipeline_mode<synchronous>, transform_indices = @transform_0, window_bounds = array<i64: 2, 64, 128>}, {pipeline_mode = #tpu.pipeline_mode<synchronous>, transform_indices = @transform_1, window_bounds = array<i64: 128, 48>}, {pipeline_mode = #tpu.pipeline_mode<synchronous>, transform_indices = @transform_2, window_bounds = array<i64: 16, 128>}, {pipeline_mode = #tpu.pipeline_mode<synchronous>, transform_indices = @transform_3, window_bounds = array<i64: 2, 128>}, {pipeline_mode = #tpu.pipeline_mode<synchronous>, transform_indices = @transform_4, window_bounds = array<i64: 2, 64, 128>}]} {
    %c0 = arith.constant 0 : index
    %c0_0 = arith.constant 0 : index
    %c0_1 = arith.constant 0 : index
    %0 = vector.load %arg1[%c0, %c0_0, %c0_1] : memref<2x64x128xf32, #tpu.memory_space<vmem>>, vector<2x64x128xf32>
    %1 = vector.shape_cast %0 : vector<2x64x128xf32> to vector<128x128xf32>
    %c0_2 = arith.constant 0 : index
    %c0_3 = arith.constant 0 : index
    %2 = vector.load %arg2[%c0_2, %c0_3] : memref<128x48xf32, #tpu.memory_space<vmem>>, vector<128x48xf32>
    %cst = arith.constant dense<0.000000e+00> : vector<128x48xf32>
    %3 = tpu.matmul %1, %2, %cst {dimension_numbers = #tpu.dot_dimension_numbers<[1], [0], [0], [1], [0, 0, 1, 1], [], []>} : vector<128x128xf32>, vector<128x48xf32>, vector<128x48xf32> -> vector<128x48xf32>
    %4 = vector.extract_strided_slice %3 {offsets = [0, 0], sizes = [128, 16], strides = [1, 1]} : vector<128x48xf32> to vector<128x16xf32>
    %5 = vector.extract_strided_slice %3 {offsets = [0, 16], sizes = [128, 16], strides = [1, 1]} : vector<128x48xf32> to vector<128x16xf32>
    %6 = vector.extract_strided_slice %3 {offsets = [0, 32], sizes = [128, 16], strides = [1, 1]} : vector<128x48xf32> to vector<128x16xf32>
    %7 = tpu.iota {dimensions = array<i32: 0>} : vector<128x16xi32>
    %c64_i32 = arith.constant 64 : i32
    %c0_i32 = arith.constant 0 : i32
    %8 = arith.cmpi eq, %c64_i32, %c0_i32 : i32
    %c1_i32 = arith.constant 1 : i32
    %9 = arith.select %8, %c1_i32, %c64_i32 : i32
    %10 = vector.broadcast %9 : i32 to vector<128x16xi32>
    %11 = arith.remsi %7, %10 : vector<128x16xi32>
    %c0_i32_4 = arith.constant 0 : i32
    %12 = vector.broadcast %c0_i32_4 : i32 to vector<128x16xi32>
    %13 = arith.cmpi ne, %11, %12 : vector<128x16xi32>
    %c0_i32_5 = arith.constant 0 : i32
    %14 = vector.broadcast %c0_i32_5 : i32 to vector<128x16xi32>
    %15 = arith.cmpi slt, %11, %14 : vector<128x16xi32>
    %c0_i32_6 = arith.constant 0 : i32
    %16 = arith.cmpi slt, %9, %c0_i32_6 : i32
    %17 = vector.broadcast %16 : i1 to vector<128x16xi1>
    %18 = vector.broadcast %17 : vector<128x16xi1> to vector<128x16xi1>
    %19 = arith.xori %15, %18 : vector<128x16xi1>
    %20 = arith.andi %19, %13 : vector<128x16xi1>
    %21 = vector.broadcast %9 : i32 to vector<128x16xi32>
    %22 = arith.addi %11, %21 : vector<128x16xi32>
    %23 = arith.select %20, %22, %11 : vector<128x16xi1>, vector<128x16xi32>
    %c0_i32_7 = arith.constant 0 : i32
    %24 = vector.broadcast %c0_i32_7 : i32 to vector<128x16xi32>
    %25 = arith.cmpi eq, %23, %24 : vector<128x16xi32>
    %c1_i32_8 = arith.constant 1 : i32
    %26 = tpu.dynamic_rotate %4 by %c1_i32_8 dim 0 : vector<128x16xf32>, i32 -> vector<128x16xf32>
    %cst_9 = arith.constant 0.000000e+00 : f32
    %27 = vector.broadcast %cst_9 : f32 to vector<128x16xf32>
    %28 = arith.select %25, %27, %26 : vector<128x16xi1>, vector<128x16xf32>
    %c64_i32_10 = arith.constant 64 : i32
    %c0_i32_11 = arith.constant 0 : i32
    %29 = arith.cmpi eq, %c64_i32_10, %c0_i32_11 : i32
    %c1_i32_12 = arith.constant 1 : i32
    %30 = arith.select %29, %c1_i32_12, %c64_i32_10 : i32
    %31 = vector.broadcast %30 : i32 to vector<128x16xi32>
    %32 = arith.remsi %7, %31 : vector<128x16xi32>
    %c0_i32_13 = arith.constant 0 : i32
    %33 = vector.broadcast %c0_i32_13 : i32 to vector<128x16xi32>
    %34 = arith.cmpi ne, %32, %33 : vector<128x16xi32>
    %c0_i32_14 = arith.constant 0 : i32
    %35 = vector.broadcast %c0_i32_14 : i32 to vector<128x16xi32>
    %36 = arith.cmpi slt, %32, %35 : vector<128x16xi32>
    %c0_i32_15 = arith.constant 0 : i32
    %37 = arith.cmpi slt, %30, %c0_i32_15 : i32
    %38 = vector.broadcast %37 : i1 to vector<128x16xi1>
    %39 = vector.broadcast %38 : vector<128x16xi1> to vector<128x16xi1>
    %40 = arith.xori %36, %39 : vector<128x16xi1>
    %41 = arith.andi %40, %34 : vector<128x16xi1>
    %42 = vector.broadcast %30 : i32 to vector<128x16xi32>
    %43 = arith.addi %32, %42 : vector<128x16xi32>
    %44 = arith.select %41, %43, %32 : vector<128x16xi1>, vector<128x16xi32>
    %c63_i32 = arith.constant 63 : i32
    %45 = vector.broadcast %c63_i32 : i32 to vector<128x16xi32>
    %46 = arith.cmpi eq, %44, %45 : vector<128x16xi32>
    %c127_i32 = arith.constant 127 : i32
    %47 = tpu.dynamic_rotate %6 by %c127_i32 dim 0 : vector<128x16xf32>, i32 -> vector<128x16xf32>
    %cst_16 = arith.constant 0.000000e+00 : f32
    %48 = vector.broadcast %cst_16 : f32 to vector<128x16xf32>
    %49 = arith.select %46, %48, %47 : vector<128x16xi1>, vector<128x16xf32>
    %50 = arith.addf %5, %28 : vector<128x16xf32>
    %51 = arith.addf %50, %49 : vector<128x16xf32>
    %52 = arith.negf %51 : vector<128x16xf32>
    %53 = math.exp %52 : vector<128x16xf32>
    %cst_17 = arith.constant 1.000000e+00 : f32
    %54 = vector.broadcast %cst_17 : f32 to vector<128x16xf32>
    %55 = arith.addf %54, %53 : vector<128x16xf32>
    %56 = arith.divf %54, %55 : vector<128x16xf32>
    %c0_18 = arith.constant 0 : index
    %c0_19 = arith.constant 0 : index
    %57 = vector.load %arg3[%c0_18, %c0_19] : memref<16x128xf32, #tpu.memory_space<vmem>>, vector<16x128xf32>
    %cst_20 = arith.constant dense<0.000000e+00> : vector<128x128xf32>
    %58 = tpu.matmul %56, %57, %cst_20 {dimension_numbers = #tpu.dot_dimension_numbers<[1], [0], [0], [1], [0, 0, 1, 1], [], []>} : vector<128x16xf32>, vector<16x128xf32>, vector<128x128xf32> -> vector<128x128xf32>
    %59 = arith.addf %1, %58 : vector<128x128xf32>
    %cst_21 = arith.constant dense<0.000000e+00> : vector<128xf32>
    %60 = vector.multi_reduction <add>, %59, %cst_21 [1] : vector<128x128xf32> to vector<128xf32>
    %61 = vector.shape_cast %60 : vector<128xf32> to vector<128x1xf32>
    %cst_22 = arith.constant 1.280000e+02 : f32
    %62 = vector.broadcast %cst_22 : f32 to vector<128x1xf32>
    %63 = arith.divf %61, %62 : vector<128x1xf32>
    %64 = vector.broadcast %63 : vector<128x1xf32> to vector<128x128xf32>
    %65 = arith.subf %59, %64 : vector<128x128xf32>
    %66 = arith.mulf %65, %65 : vector<128x128xf32>
    %cst_23 = arith.constant dense<0.000000e+00> : vector<128xf32>
    %67 = vector.multi_reduction <add>, %66, %cst_23 [1] : vector<128x128xf32> to vector<128xf32>
    %68 = vector.shape_cast %67 : vector<128xf32> to vector<128x1xf32>
    %cst_24 = arith.constant 1.280000e+02 : f32
    %69 = vector.broadcast %cst_24 : f32 to vector<128x1xf32>
    %70 = arith.divf %68, %69 : vector<128x1xf32>
    %cst_25 = arith.constant 9.99999974E-6 : f32
    %71 = vector.broadcast %cst_25 : f32 to vector<128x1xf32>
    %72 = arith.addf %70, %71 : vector<128x1xf32>
    %73 = math.rsqrt %72 : vector<128x1xf32>
    %74 = vector.broadcast %73 : vector<128x1xf32> to vector<128x128xf32>
    %75 = arith.mulf %65, %74 : vector<128x128xf32>
    %c0_26 = arith.constant 0 : index
    %c0_27 = arith.constant 0 : index
    %76 = vector.load %arg4[%c0_26, %c0_27] : memref<2x128xf32, #tpu.memory_space<vmem>>, vector<1x128xf32>
    %77 = vector.broadcast %76 : vector<1x128xf32> to vector<128x128xf32>
    %78 = arith.mulf %75, %77 : vector<128x128xf32>
    %c1 = arith.constant 1 : index
    %c0_28 = arith.constant 0 : index
    %79 = vector.load %arg4[%c1, %c0_28] : memref<2x128xf32, #tpu.memory_space<vmem>>, vector<1x128xf32>
    %80 = vector.broadcast %79 : vector<1x128xf32> to vector<128x128xf32>
    %81 = arith.addf %78, %80 : vector<128x128xf32>
    %82 = vector.shape_cast %81 : vector<128x128xf32> to vector<2x64x128xf32>
    %c0_29 = arith.constant 0 : index
    %c0_30 = arith.constant 0 : index
    %c0_31 = arith.constant 0 : index
    %83 = vector.load %arg5[%c0_29, %c0_30, %c0_31] : memref<2x64x128xf32, #tpu.memory_space<vmem>>, vector<2x64x128xf32>
    tpu.vector_store %arg5[%c0_29, %c0_30, %c0_31], %82 {strides = array<i32>} : memref<2x64x128xf32, #tpu.memory_space<vmem>>, vector<2x64x128xf32>,
    return
  }
  func.func @transform_0(%arg0: i32) -> (i32, i32, i32) {
    %c0_i32 = arith.constant 0 : i32
    %c0_i32_0 = arith.constant 0 : i32
    %c0_i32_1 = arith.constant 0 : i32
    %c0_i32_2 = arith.constant 0 : i32
    return %c0_i32, %c0_i32_0, %c0_i32_1 : i32, i32, i32
  }
  func.func @transform_1(%arg0: i32) -> (i32, i32) {
    %c0_i32 = arith.constant 0 : i32
    %c0_i32_0 = arith.constant 0 : i32
    %c0_i32_1 = arith.constant 0 : i32
    return %c0_i32, %c0_i32_0 : i32, i32
  }
  func.func @transform_2(%arg0: i32) -> (i32, i32) {
    %c0_i32 = arith.constant 0 : i32
    %c0_i32_0 = arith.constant 0 : i32
    %c0_i32_1 = arith.constant 0 : i32
    return %c0_i32, %c0_i32_0 : i32, i32
  }
  func.func @transform_3(%arg0: i32) -> (i32, i32) {
    %c0_i32 = arith.constant 0 : i32
    %c0_i32_0 = arith.constant 0 : i32
    %c0_i32_1 = arith.constant 0 : i32
    return %c0_i32, %c0_i32_0 : i32, i32
  }
  func.func @transform_4(%arg0: i32) -> (i32, i32, i32) {
    %c0_i32 = arith.constant 0 : i32
    %c0_i32_0 = arith.constant 0 : i32
    %c0_i32_1 = arith.constant 0 : i32
    %c0_i32_2 = arith.constant 0 : i32
    return %c0_i32, %c0_i32_0, %c0_i32_1 : i32, i32, i32
  }
}

</mosaic_0001>

<bundles_post_ra>
// kernel: external_dependency_attention.1
= control target key start
LH: loop header
LB: loop body
LE: loop exit
PB: predicated region body
PF: predicated region fallthrough
CT: control target
= control target key end

     0   :  { %s2293_s0 = inlined_call_operand.vmem [shape: f32[2,64,128], index: 0, kind: input, shape index: {}]   ;;  %s2294_s1 = inlined_call_operand.vmem [shape: f32[128,48], index: 1, kind: input, shape index: {}]   ;;  %s2295_s2 = inlined_call_operand.vmem [shape: f32[16,128], index: 2, kind: input, shape index: {}]   ;;  %s2296_s3 = inlined_call_operand.vmem [shape: f32[2,128], index: 3, kind: input, shape index: {}]   ;;  %s2297_s4 = inlined_call_operand.hbm [shape: f32[2,64,128], index: 4, kind: output, shape index: {}]  }
   0x1   :  { %v34_v0 = vld [vmem:[%s2294_s1] sm:$0xff]  ;;  %v35_v1 = vld [vmem:[%s2294_s1 + $0x8] sm:$0xff]  ;;  %v36_v2 = vld [vmem:[%s2294_s1 + $0x10] sm:$0xff] }
   0x2   :  { %v1517_v3 = vpack.c.bf16 %v35_v1, %v34_v0  ;;  %v37_v4 = vld [vmem:[%s2294_s1 + $0x18] sm:$0xff]  ;;  %v38_v6 = vld [vmem:[%s2294_s1 + $0x20] sm:$0xff]  ;;  %v39_v7 = vld [vmem:[%s2294_s1 + $0x28] sm:$0xff] }
   0x3   :  { %v1521_v5 = vpack.c.bf16 %v37_v4, %v36_v2  ;;  %v1525_v8 = vpack.c.bf16 %v39_v7, %v38_v6  ;;  %v1731_v9 = vld [vmem:[%s2293_s0] sm:$0xff]  ;;  %v40_v10 = vld [vmem:[%s2294_s1 + $0x30] sm:$0xff]  ;;  %v41_v11 = vld [vmem:[%s2294_s1 + $0x38] sm:$0xff] }
   0x4   :  { %1518 = vmatprep.subr.bf16.mxu0 %v1517_v3  ;;  %1465 = vmatprep.mubr.f32.mxu0 %v1731_v9  ;;  %v1529_v12 = vpack.c.bf16 %v41_v11, %v40_v10  ;;  %v42_v13 = vld [vmem:[%s2294_s1 + $0x40] sm:$0xff]  ;;  %v43_v14 = vld [vmem:[%s2294_s1 + $0x48] sm:$0xff] }
   0x5   :  { %1520 = vmatpush3.bf16.msra.mxu0 %v1517_v3 }
   0x6   :  { %1522 = vmatprep.subr.bf16.mxu0 %v1521_v5 }
   0x9   :  { %1524 = vmatpush3.bf16.msra.mxu0 %v1521_v5 }
   0xa   :  { %1526 = vmatprep.subr.bf16.mxu0 %v1525_v8 }
   0xb   :  { %9 = vsyncpa [#allocation3], 0  ;;  %v1533_v15 = vpack.c.bf16 %v43_v14, %v42_v13  ;;  %v44_v16 = vld [vmem:[%s2294_s1 + $0x50] sm:$0xff]  ;;  %v45_v17 = vld [vmem:[%s2294_s1 + $0x58] sm:$0xff]  ;;  %v195_v40 = vlaneseq  ;;  %s1679_s26 = smov 96   ;;  %vm904_vm6 = vcmask 130048  }
   0xc   :  { %v1537_v18 = vpack.c.bf16 %v45_v17, %v44_v16  ;;  %v46_v19 = vld [vmem:[%s2294_s1 + $0x60] sm:$0xff]  ;;  %v47_v20 = vld [vmem:[%s2294_s1 + $0x68] sm:$0xff]  ;;  %v48_v22 = vld [vmem:[%s2294_s1 + $0x70] sm:$0xff] }
   0xd   :  { %1528 = vmatpush3.bf16.msra.mxu0 %v1525_v8  ;;  %v1541_v21 = vpack.c.bf16 %v47_v20, %v46_v19  ;;  %v49_v23 = vld [vmem:[%s2294_s1 + $0x78] sm:$0xff]  ;;  %v1767_v25 = vld [vmem:[%s2293_s0 + $0x8] sm:$0xff]  ;;  %v1772_v26 = vld [vmem:[%s2293_s0 + $0x10] sm:$0xff]  ;;  %v1854_v41 = vshrl.u32 %v195_v40, 7 }
   0xe   :  { %1530 = vmatprep.subr.bf16.mxu0 %v1529_v12  ;;  %v1545_v24 = vpack.c.bf16 %v49_v23, %v48_v22  ;;  %v1779_v27 = vld [vmem:[%s2293_s0 + $0x18] sm:$0xff]  ;;  %v1784_v28 = vld [vmem:[%s2293_s0 + $0x20] sm:$0xff]  ;;  %v1791_v29 = vld [vmem:[%s2293_s0 + $0x28] sm:$0xff] }
   0xf   :  { %v1796_v30 = vld [vmem:[%s2293_s0 + $0x30] sm:$0xff]  ;;  %v1803_v31 = vld [vmem:[%s2293_s0 + $0x38] sm:$0xff]  ;;  %v1808_v32 = vld [vmem:[%s2293_s0 + $0x40] sm:$0xff]  ;;  %vm436_vm0 = vcmp.lt.s32.totalorder %v1854_v41, 1  ;;  %vm565_vm3 = vcmp.lt.s32.totalorder %v1854_v41, 7 }
  0x10   :  { %v1815_v33 = vld [vmem:[%s2293_s0 + $0x48] sm:$0xff]  ;;  %v1820_v34 = vld [vmem:[%s2293_s0 + $0x50] sm:$0xff]  ;;  %v1827_v35 = vld [vmem:[%s2293_s0 + $0x58] sm:$0xff] }
  0x11   :  { %1532 = vmatpush3.bf16.msra.mxu0 %v1529_v12  ;;  %v1832_v36 = vld [vmem:[%s2293_s0 + $0x60] sm:$0xff]  ;;  %v1839_v37 = vld [vmem:[%s2293_s0 + $0x68] sm:$0xff]  ;;  %v1844_v38 = vld [vmem:[%s2293_s0 + $0x70] sm:$0xff] }
  0x12   :  { %1534 = vmatprep.subr.bf16.mxu0 %v1533_v15  ;;  %v1851_v39 = vld [vmem:[%s2293_s0 + $0x78] sm:$0xff]  ;;  %s1680_s0 = smov 16  }
  0x15   :  { %1536 = vmatpush3.bf16.msra.mxu0 %v1533_v15 }
  0x16   :  { %1538 = vmatprep.subr.bf16.mxu0 %v1537_v18 }
  0x19   :  { %1540 = vmatpush3.bf16.msra.mxu0 %v1537_v18 }
  0x1a   :  { %1542 = vmatprep.subr.bf16.mxu0 %v1541_v21 }
  0x1d   :  { %1544 = vmatpush3.bf16.msra.mxu0 %v1541_v21 }
  0x1e   :  { %1546 = vmatprep.subr.bf16.mxu0 %v1545_v24 }
  0x21   :  { %1548 = vmatpush3.bf16.msra.mxu0 %v1545_v24 }
  0x24   :  { %1466 = vmatmul.mubr.f32.vlgmr.msra.gmra.mrb[0].mxu0 %v1767_v25 }
  0x25   :  { %1468 = vmatprep.mubr.f32.mxu0 %v1772_v26 }
  0x28   :  { %1469 = vmatmul.mubr.f32.gmra.mrb[2].mxu0 %v1779_v27 }
  0x29   :  { %1471 = vmatprep.mubr.f32.mxu0 %v1784_v28 }
  0x2c   :  { %1472 = vmatmul.mubr.f32.gmra.mrb[4].mxu0 %v1791_v29 }
  0x2d   :  { %1474 = vmatprep.mubr.f32.mxu0 %v1796_v30 }
  0x30   :  { %1475 = vmatmul.mubr.f32.gmra.mrb[6].mxu0 %v1803_v31 }
  0x31   :  { %1477 = vmatprep.mubr.f32.mxu0 %v1808_v32 }
  0x34   :  { %1478 = vmatmul.mubr.f32.gmra.mrb[8].mxu0 %v1815_v33 }
  0x35   :  { %1480 = vmatprep.mubr.f32.mxu0 %v1820_v34 }
  0x38   :  { %1481 = vmatmul.mubr.f32.gmra.mrb[10].mxu0 %v1827_v35 }
  0x39   :  { %1483 = vmatprep.mubr.f32.mxu0 %v1832_v36 }
  0x3c   :  { %1484 = vmatmul.mubr.f32.gmra.mrb[12].mxu0 %v1839_v37 }
  0x3d   :  { %1486 = vmatprep.mubr.f32.mxu0 %v1844_v38 }
  0x40   :  { %1487 = vmatmul.mubr.f32.gmra.mrb[14].mxu0 %v1851_v39 }
  0xf7   :  { %v1856_v42 = vpop.f32.mrb[0].mxu0 }
  0xf8   :  { %v421_v43 = vrot.slane %v1856_v42, 7  ;;  %503 = vrot.lane.b32.xlu0 %v1856_v42, %s1679_s26  ;;  %v1861_v44 = vpop.f32.mrb[1].mxu0 }
  0xf9   :  { %v420_v45 = vrot.slane %v1861_v44, 7 }
  0xfb   :  { %v1865_v46 = vpop.f32.mrb[2].mxu0  ;;  %v451_v47 = vsel %vm436_vm0, %v420_v45, %v421_v43 }
  0xfc   :  { %v423_v48 = vrot.slane %v1865_v46, 7  ;;  %501 = vrot.lane.b32.xlu0 %v1861_v44, %s1679_s26  ;;  %v1872_v49 = vpop.f32.mrb[3].mxu0 }
  0xfd   :  { %v422_v50 = vrot.slane %v1872_v49, 7  ;;  %505 = vrot.lane.b32.xlu1 %v1872_v49, %s1679_s26 }
  0xff   :  { %v1877_v51 = vpop.f32.mrb[4].mxu0  ;;  %v450_v52 = vsel %vm436_vm0, %v421_v43, %v422_v50  ;;  %v449_v53 = vsel %vm436_vm0, %v422_v50, %v423_v48 }
 0x100   :  { %v425_v54 = vrot.slane %v1877_v51, 7  ;;  %v1884_v55 = vpop.f32.mrb[5].mxu0 }
 0x101   :  { %v424_v56 = vrot.slane %v1884_v55, 7  ;;  %507 = vrot.lane.b32.xlu1 %v1865_v46, %s1679_s26  ;;  %509 = vrot.lane.b32.xlu0 %v1884_v55, %s1679_s26 }
 0x103   :  { %v1891_v57 = vpop.f32.mrb[6].mxu0  ;;  %v448_v58 = vsel %vm436_vm0, %v423_v48, %v424_v56  ;;  %v447_v59 = vsel %vm436_vm0, %v424_v56, %v425_v54  ;;  %v204_v48 = vadd.s32 64, %v1854_v41 }
 0x104   :  { %v427_v60 = vrot.slane %v1891_v57, 7  ;;  %v1898_v61 = vpop.f32.mrb[7].mxu0 }
 0x105   :  { %v426_v62 = vrot.slane %v1898_v61, 7  ;;  %511 = vrot.lane.b32.xlu1 %v1877_v51, %s1679_s26  ;;  %513 = vrot.lane.b32.xlu0 %v1898_v61, %s1679_s26  ;;  %v272_v50 = vand.u32 63, %v204_v48 }
 0x107   :  { %v1905_v63 = vpop.f32.mrb[8].mxu0  ;;  %v446_v0 = vsel %vm436_vm0, %v425_v54, %v426_v62  ;;  %v445_v1 = vsel %vm436_vm0, %v426_v62, %v427_v60  ;;  %vm412_vm1 = vcmp.eq.s32.totalorder %v272_v50, 0 }
 0x108   :  { %v429_v2 = vrot.slane %v1905_v63, 7  ;;  %v1912_v3 = vpop.f32.mrb[9].mxu0 }
 0x109   :  { %v428_v4 = vrot.slane %v1912_v3, 7  ;;  %515 = vrot.lane.b32.xlu1 %v1891_v57, %s1679_s26  ;;  %517 = vrot.lane.b32.xlu0 %v1912_v3, %s1679_s26 }
 0x10b   :  { %v1919_v5 = vpop.f32.mrb[10].mxu0  ;;  %v444_v6 = vsel %vm436_vm0, %v427_v60, %v428_v4  ;;  %v443_v7 = vsel %vm436_vm0, %v428_v4, %v429_v2 }
 0x10c   :  { %v431_v8 = vrot.slane %v1919_v5, 7  ;;  %v1926_v10 = vpop.f32.mrb[11].mxu0 }
 0x10d   :  { %v430_v11 = vrot.slane %v1926_v10, 7  ;;  %519 = vrot.lane.b32.xlu1 %v1905_v63, %s1679_s26  ;;  %521 = vrot.lane.b32.xlu0 %v1926_v10, %s1679_s26 }
 0x10f   :  { %v1933_v12 = vpop.f32.mrb[12].mxu0  ;;  %v442_v13 = vsel %vm436_vm0, %v429_v2, %v430_v11  ;;  %v441_v14 = vsel %vm436_vm0, %v430_v11, %v431_v8 }
 0x110   :  { %v433_v15 = vrot.slane %v1933_v12, 7  ;;  %v1940_v16 = vpop.f32.mrb[13].mxu0 }
 0x111   :  { %v432_v17 = vrot.slane %v1940_v16, 7  ;;  %523 = vrot.lane.b32.xlu1 %v1919_v5, %s1679_s26  ;;  %525 = vrot.lane.b32.xlu0 %v1940_v16, %s1679_s26 }
 0x113   :  { %v1947_v18 = vpop.f32.mrb[14].mxu0  ;;  %v440_v19 = vsel %vm436_vm0, %v431_v8, %v432_v17  ;;  %v439_v20 = vsel %vm436_vm0, %v432_v17, %v433_v15 }
 0x114   :  { %v435_v21 = vrot.slane %v1947_v18, 7  ;;  %v1954_v22 = vpop.f32.mrb[15].mxu0 }
 0x115   :  { %v434_v23 = vrot.slane %v1954_v22, 7  ;;  %527 = vrot.lane.b32.xlu1 %v1933_v12, %s1679_s26  ;;  %529 = vrot.lane.b32.xlu0 %v1954_v22, %s1679_s26 }
 0x116   :  { %v452_v24 = vsel %vm436_vm0, %v435_v21, %v420_v45  ;;  %v461_v45 = vsel %vm412_vm1, 0.0, %v444_v6 }
 0x117   :  { %v438_v40 = vsel %vm436_vm0, %v433_v15, %v434_v23  ;;  %v437_v43 = vsel %vm436_vm0, %v434_v23, %v435_v21 }
 0x119   :  { %531 = vrot.lane.b32.xlu1 %v1947_v18, %s1679_s26  ;;  %618 = vrot.lane.b32.xlu0 %v450_v52, %s1680_s0  ;;  %v216_v52 = vand.u32 63, %v1854_v41 }
 0x11b   :  { %vm404_vm2 = vcmp.eq.s32.totalorder %v216_v52, 0 }
 0x11d   :  { %616 = vrot.lane.b32.xlu1 %v451_v47, %s1680_s0  ;;  %622 = vrot.lane.b32.xlu0 %v448_v58, %s1680_s0  ;;  %v453_v47 = vsel %vm404_vm2, 0.0, %v452_v24 }
 0x121   :  { %620 = vrot.lane.b32.xlu1 %v449_v53, %s1680_s0  ;;  %626 = vrot.lane.b32.xlu0 %v446_v0, %s1680_s0 }
 0x125   :  { %624 = vrot.lane.b32.xlu1 %v447_v59, %s1680_s0  ;;  %630 = vrot.lane.b32.xlu0 %v461_v45, %s1680_s0 }
 0x129   :  { %628 = vrot.lane.b32.xlu1 %v445_v1, %s1680_s0  ;;  %634 = vrot.lane.b32.xlu0 %v442_v13, %s1680_s0 }
 0x12d   :  { %632 = vrot.lane.b32.xlu1 %v443_v7, %s1680_s0  ;;  %638 = vrot.lane.b32.xlu0 %v440_v19, %s1680_s0  ;;  %v203_v7 = vadd.s32 56, %v1854_v41 }
 0x12f   :  { %v265_v19 = vand.u32 63, %v203_v7 }
 0x131   :  { %636 = vrot.lane.b32.xlu1 %v441_v14, %s1680_s0  ;;  %614 = vrot.lane.b32.xlu0 %v453_v47, %s1680_s0  ;;  %vm476_vm4 = vcmp.eq.s32.totalorder %v265_v19, 63 }
 0x135   :  { %640 = vrot.lane.b32.xlu1 %v439_v20, %s1680_s0  ;;  %642 = vrot.lane.b32.xlu0 %v438_v40, %s1680_s0 }
 0x139   :  { %644 = vrot.lane.b32.xlu1 %v437_v43, %s1680_s0 }
 0x16a   :  { %v504_v53 = vpop.permute.xlu0 %503 }
 0x16b   :  { %v550_v56 = vrot.slane %v504_v53, 1 }
 0x16e   :  { %v1987_v54 = vpop.permute.xlu0 %501 }
 0x16f   :  { %v549_v58 = vrot.slane %v1987_v54, 1  ;;  %v506_v59 = vpop.permute.xlu1 %505 }
 0x170   :  { %v551_v60 = vrot.slane %v506_v59, 1 }
 0x171   :  { %v580_v62 = vsel %vm565_vm3, %v549_v58, %v550_v56 }
 0x172   :  { %694 = vrot.lane.b32.xlu0 %v580_v62, %s1680_s0  ;;  %v579_v0 = vsel %vm565_vm3, %v550_v56, %v551_v60 }
 0x173   :  { %v508_v1 = vpop.permute.xlu1 %507  ;;  %v510_v2 = vpop.permute.xlu0 %509  ;;  %696 = vrot.lane.b32.xlu1 %v579_v0, %s1680_s0 }
 0x174   :  { %v552_v4 = vrot.slane %v508_v1, 1  ;;  %v553_v6 = vrot.slane %v510_v2, 1 }
 0x176   :  { %v578_v8 = vsel %vm565_vm3, %v551_v60, %v552_v4  ;;  %v577_v11 = vsel %vm565_vm3, %v552_v4, %v553_v6  ;;  %v211_v4 = vadd.s32 120, %v1854_v41 }
 0x177   :  { %v512_v13 = vpop.permute.xlu1 %511  ;;  %v514_v14 = vpop.permute.xlu0 %513  ;;  %698 = vrot.lane.b32.xlu0 %v578_v8, %s1680_s0  ;;  %700 = vrot.lane.b32.xlu1 %v577_v11, %s1680_s0 }
 0x178   :  { %v554_v15 = vrot.slane %v512_v13, 1  ;;  %v555_v17 = vrot.slane %v514_v14, 1 }
 0x17a   :  { %v576_v20 = vsel %vm565_vm3, %v553_v6, %v554_v15  ;;  %v575_v21 = vsel %vm565_vm3, %v554_v15, %v555_v17  ;;  %v321_v15 = vand.u32 63, %v211_v4 }
 0x17b   :  { %v516_v23 = vpop.permute.xlu1 %515  ;;  %v518_v24 = vpop.permute.xlu0 %517  ;;  %702 = vrot.lane.b32.xlu0 %v576_v20, %s1680_s0  ;;  %704 = vrot.lane.b32.xlu1 %v575_v21, %s1680_s0 }
 0x17c   :  { %v556_v40 = vrot.slane %v516_v23, 1  ;;  %v557_v43 = vrot.slane %v518_v24, 1  ;;  %vm484_vm5 = vcmp.eq.s32.totalorder %v321_v15, 63 }
 0x17e   :  { %v574_v48 = vsel %vm565_vm3, %v555_v17, %v556_v40  ;;  %v573_v50 = vsel %vm565_vm3, %v556_v40, %v557_v43 }
 0x17f   :  { %v520_v45 = vpop.permute.xlu1 %519  ;;  %v522_v52 = vpop.permute.xlu0 %521  ;;  %706 = vrot.lane.b32.xlu0 %v574_v48, %s1680_s0  ;;  %v589_v47 = vsel %vm476_vm4, 0.0, %v573_v50  ;;  %v855_v48 = vld [vmem:[%s2295_s2 + $0x8] sm:$0xff] }
 0x180   :  { %v558_v53 = vrot.slane %v520_v45, 1  ;;  %v559_v56 = vrot.slane %v522_v52, 1  ;;  %708 = vrot.lane.b32.xlu1 %v589_v47, %s1680_s0 }
 0x182   :  { %v572_v59 = vsel %vm565_vm3, %v557_v43, %v558_v53  ;;  %v571_v60 = vsel %vm565_vm3, %v558_v53, %v559_v56  ;;  %v854_v43 = vld [vmem:[%s2295_s2] sm:$0xff]  ;;  %s1681_s2 = smov 112  }
 0x183   :  { %v524_v62 = vpop.permute.xlu1 %523  ;;  %v526_v0 = vpop.permute.xlu0 %525  ;;  %710 = vrot.lane.b32.xlu0 %v572_v59, %s1680_s0  ;;  %v1549_v50 = vpack.c.bf16 %v855_v48, %v854_v43 }
 0x184   :  { %v560_v1 = vrot.slane %v524_v62, 1  ;;  %v561_v2 = vrot.slane %v526_v0, 1  ;;  %712 = vrot.lane.b32.xlu1 %v571_v60, %s1680_s0 }
 0x185   :  { %1550 = vmatprep.subr.bf16.mxu1 %v1549_v50 }
 0x186   :  { %v570_v6 = vsel %vm565_vm3, %v559_v56, %v560_v1  ;;  %v569_v7 = vsel %vm565_vm3, %v560_v1, %v561_v2  ;;  %1552 = vmatpush3.bf16.msra.mxu1 %v1549_v50 }
 0x187   :  { %v528_v8 = vpop.permute.xlu1 %527  ;;  %v530_v11 = vpop.permute.xlu0 %529  ;;  %714 = vrot.lane.b32.xlu0 %v570_v6, %s1680_s0 }
 0x188   :  { %v562_v13 = vrot.slane %v528_v8, 1  ;;  %v563_v14 = vrot.slane %v530_v11, 1  ;;  %716 = vrot.lane.b32.xlu1 %v569_v7, %s1680_s0 }
 0x18a   :  { %v568_v17 = vsel %vm565_vm3, %v561_v2, %v562_v13  ;;  %v567_v19 = vsel %vm565_vm3, %v562_v13, %v563_v14 }
 0x18b   :  { %v532_v20 = vpop.permute.xlu1 %531  ;;  %718 = vrot.lane.b32.xlu0 %v568_v17, %s1680_s0  ;;  %v619_v54 = vpop.permute.xlu0 %618 }
 0x18c   :  { %v564_v21 = vrot.slane %v532_v20, 1  ;;  %720 = vrot.lane.b32.xlu1 %v567_v19, %s1680_s0  ;;  %v664_v19 = vadd.f32 %v619_v54, %v1872_v49 }
 0x18e   :  { %v566_v23 = vsel %vm565_vm3, %v563_v14, %v564_v21  ;;  %v581_v24 = vsel %vm565_vm3, %v564_v21, %v549_v58 }
 0x18f   :  { %722 = vrot.lane.b32.xlu0 %v566_v23, %s1680_s0  ;;  %v597_v40 = vsel %vm484_vm5, 0.0, %v581_v24  ;;  %v617_v45 = vpop.permute.xlu1 %616  ;;  %v623_v41 = vpop.permute.xlu0 %622 }
 0x190   :  { %724 = vrot.lane.b32.xlu1 %v597_v40, %s1680_s0  ;;  %v663_v8 = vadd.f32 %v1856_v42, %v617_v45 }
 0x193   :  { %v621_v58 = vpop.permute.xlu1 %620  ;;  %v627_v52 = vpop.permute.xlu0 %626 }
 0x194   :  { %v665_v20 = vadd.f32 %v1865_v46, %v621_v58  ;;  %v668_v46 = vadd.f32 %v627_v52, %v1898_v61 }
 0x197   :  { %v625_v47 = vpop.permute.xlu1 %624  ;;  %v631_v53 = vpop.permute.xlu0 %630 }
 0x198   :  { %v667_v42 = vadd.f32 %v1877_v51, %v625_v47 }
 0x19b   :  { %v629_v56 = vpop.permute.xlu1 %628  ;;  %v635_v59 = vpop.permute.xlu0 %634 }
 0x19f   :  { %v633_v60 = vpop.permute.xlu1 %632  ;;  %v2051_v62 = vpop.permute.xlu0 %638 }
 0x1a3   :  { %v637_v0 = vpop.permute.xlu1 %636  ;;  %v615_v1 = vpop.permute.xlu0 %614 }
 0x1a4   :  { %v662_v7 = vadd.f32 %v615_v1, %v1861_v44  ;;  %v666_v44 = vadd.f32 %v623_v41, %v1884_v55 }
 0x1a7   :  { %v2053_v2 = vpop.permute.xlu1 %640  ;;  %v2055_v4 = vpop.permute.xlu0 %642 }
 0x1ab   :  { %v2057_v6 = vpop.permute.xlu1 %644 }
 0x1e4   :  { %v695_v11 = vpop.permute.xlu0 %694 }
 0x1e5   :  { %v742_v13 = vadd.f32 %v695_v11, %v662_v7  ;;  %v697_v14 = vpop.permute.xlu1 %696 }
 0x1e6   :  { %v743_v15 = vadd.f32 %v697_v14, %v663_v8  ;;  %v669_v8 = vadd.f32 %v1891_v57, %v629_v56  ;;  %v670_v14 = vadd.f32 %v631_v53, %v1912_v3  ;;  %v673_v3 = vadd.f32 %v1919_v5, %v637_v0 }
 0x1e7   :  { %v1349_v17 = vmul.f32 -1.442695, %v742_v13  ;;  %v675_v5 = vadd.f32 %v1933_v12, %v2053_v2  ;;  %v677_v12 = vadd.f32 %v1947_v18, %v2057_v6 }
 0x1e8   :  { %v1350_v21 = vmul.f32 -1.442695, %v743_v15 }
 0x1e9   :  { %1559 = vpow2.f32 %v1349_v17  ;;  %v699_v23 = vpop.permute.xlu0 %698  ;;  %v701_v24 = vpop.permute.xlu1 %700 }
 0x1ea   :  { %1561 = vpow2.f32 %v1350_v21  ;;  %v744_v40 = vadd.f32 %v699_v23, %v664_v19  ;;  %v745_v43 = vadd.f32 %v701_v24, %v665_v20  ;;  %v671_v19 = vadd.f32 %v1905_v63, %v633_v60 }
 0x1eb   :  { %v672_v24 = vadd.f32 %v635_v59, %v1926_v10 }
 0x1ec   :  { %v1351_v48 = vmul.f32 -1.442695, %v744_v40  ;;  %v1352_v50 = vmul.f32 -1.442695, %v745_v43 }
 0x1ed   :  { %v703_v45 = vpop.permute.xlu0 %702  ;;  %v705_v1 = vpop.permute.xlu1 %704 }
 0x1ee   :  { %1563 = vpow2.f32 %v1351_v48  ;;  %v746_v7 = vadd.f32 %v703_v45, %v666_v44  ;;  %v747_v49 = vadd.f32 %v705_v1, %v667_v42  ;;  %v674_v1 = vadd.f32 %v2051_v62, %v1940_v16 }
 0x1ef   :  { %1565 = vpow2.f32 %v1352_v50  ;;  %v676_v16 = vadd.f32 %v2055_v4, %v1954_v22 }
 0x1f0   :  { %v1353_v54 = vmul.f32 -1.442695, %v746_v7  ;;  %v1354_v58 = vmul.f32 -1.442695, %v747_v49 }
 0x1f1   :  { %v707_v11 = vpop.permute.xlu0 %706 }
 0x1f2   :  { %1567 = vpow2.f32 %v1353_v54  ;;  %v748_v13 = vadd.f32 %v707_v11, %v668_v46  ;;  %v709_v55 = vpop.permute.xlu1 %708 }
 0x1f3   :  { %v1560_v41 = vpop.eup %1559  ;;  %1569 = vpow2.f32 %v1354_v58  ;;  %v749_v51 = vadd.f32 %v709_v55, %v669_v8 }
 0x1f4   :  { %v1562_v47 = vpop.eup %1561  ;;  %v806_v15 = vadd.f32 1.0, %v1560_v41  ;;  %v1355_v17 = vmul.f32 -1.442695, %v748_v13 }
 0x1f5   :  { %v807_v20 = vadd.f32 1.0, %v1562_v47  ;;  %v1356_v61 = vmul.f32 -1.442695, %v749_v51  ;;  %v711_v52 = vpop.permute.xlu0 %710 }
 0x1f6   :  { %1571 = vrcp.f32 %v806_v15  ;;  %v750_v21 = vadd.f32 %v711_v52, %v670_v14  ;;  %v713_v57 = vpop.permute.xlu1 %712 }
 0x1f7   :  { %1573 = vrcp.f32 %v807_v20  ;;  %v751_v56 = vadd.f32 %v713_v57, %v671_v19 }
 0x1f8   :  { %v1564_v23 = vpop.eup %1563  ;;  %1575 = vpow2.f32 %v1355_v17  ;;  %v1357_v40 = vmul.f32 -1.442695, %v750_v21 }
 0x1f9   :  { %v1566_v43 = vpop.eup %1565  ;;  %v808_v53 = vadd.f32 1.0, %v1564_v23  ;;  %1577 = vpow2.f32 %v1356_v61  ;;  %v1358_v44 = vmul.f32 -1.442695, %v751_v56  ;;  %v715_v63 = vpop.permute.xlu0 %714 }
 0x1fa   :  { %v809_v60 = vadd.f32 1.0, %v1566_v43  ;;  %1579 = vpow2.f32 %v1357_v40  ;;  %v752_v42 = vadd.f32 %v715_v63, %v672_v24  ;;  %v717_v48 = vpop.permute.xlu1 %716 }
 0x1fb   :  { %1581 = vrcp.f32 %v808_v53  ;;  %v753_v50 = vadd.f32 %v717_v48, %v673_v3 }
 0x1fc   :  { %v1568_v45 = vpop.eup %1567  ;;  %1583 = vrcp.f32 %v809_v60  ;;  %v1359_v10 = vmul.f32 -1.442695, %v752_v42 }
 0x1fd   :  { %v1570_v59 = vpop.eup %1569  ;;  %v810_v0 = vadd.f32 1.0, %v1568_v45  ;;  %1585 = vpow2.f32 %v1358_v44  ;;  %v1360_v7 = vmul.f32 -1.442695, %v753_v50  ;;  %v719_v49 = vpop.permute.xlu0 %718 }
 0x1fe   :  { %v811_v46 = vadd.f32 1.0, %v1570_v59  ;;  %1587 = vpow2.f32 %v1359_v10  ;;  %v754_v54 = vadd.f32 %v719_v49, %v674_v1  ;;  %v721_v58 = vpop.permute.xlu1 %720 }
 0x1ff   :  { %1589 = vrcp.f32 %v810_v0  ;;  %v755_v8 = vadd.f32 %v721_v58, %v675_v5 }
 0x200   :  { %v1572_v11 = vpop.eup %1571  ;;  %1591 = vrcp.f32 %v811_v46  ;;  %v1361_v62 = vmul.f32 -1.442695, %v754_v54 }
 0x201   :  { %v1574_v13 = vpop.eup %1573  ;;  %1593 = vpow2.f32 %v1360_v7  ;;  %v1362_v2 = vmul.f32 -1.442695, %v755_v8  ;;  %872 = vrot.lane.b32.xlu0 %v1572_v11, %s1681_s2  ;;  %v723_v55 = vpop.permute.xlu0 %722 }
 0x202   :  { %v1576_v41 = vpop.eup %1575  ;;  %1595 = vpow2.f32 %v1361_v62  ;;  %v756_v51 = vadd.f32 %v723_v55, %v676_v16  ;;  %874 = vrot.lane.b32.xlu1 %v1574_v13, %s1681_s2  ;;  %v725_v47 = vpop.permute.xlu1 %724 }
 0x203   :  { %v1578_v14 = vpop.eup %1577  ;;  %v812_v22 = vadd.f32 1.0, %v1576_v41  ;;  %1597 = vpow2.f32 %v1362_v2  ;;  %v757_v4 = vadd.f32 %v725_v47, %v677_v12 }
 0x204   :  { %v1580_v15 = vpop.eup %1579  ;;  %v813_v17 = vadd.f32 1.0, %v1578_v14  ;;  %v1363_v19 = vmul.f32 -1.442695, %v756_v51 }
 0x205   :  { %v1582_v18 = vpop.eup %1581  ;;  %1599 = vrcp.f32 %v812_v22  ;;  %v814_v6 = vadd.f32 1.0, %v1580_v15  ;;  %v1364_v20 = vmul.f32 -1.442695, %v757_v4 }
 0x206   :  { %v1584_v61 = vpop.eup %1583  ;;  %1601 = vrcp.f32 %v813_v17  ;;  %876 = vrot.lane.b32.xlu0 %v1582_v18, %s1681_s2 }
 0x207   :  { %v1586_v52 = vpop.eup %1585  ;;  %1603 = vrcp.f32 %v814_v6  ;;  %878 = vrot.lane.b32.xlu1 %v1584_v61, %s1681_s2 }
 0x208   :  { %v1588_v21 = vpop.eup %1587  ;;  %v815_v57 = vadd.f32 1.0, %v1586_v52  ;;  %1605 = vpow2.f32 %v1363_v19 }
 0x209   :  { %v1590_v56 = vpop.eup %1589  ;;  %v816_v23 = vadd.f32 1.0, %v1588_v21  ;;  %1607 = vpow2.f32 %v1364_v20 }
 0x20a   :  { %v1592_v24 = vpop.eup %1591  ;;  %1609 = vrcp.f32 %v815_v57  ;;  %880 = vrot.lane.b32.xlu0 %v1590_v56, %s1681_s2 }
 0x20b   :  { %v1594_v40 = vpop.eup %1593  ;;  %1611 = vrcp.f32 %v816_v23  ;;  %882 = vrot.lane.b32.xlu1 %v1592_v24, %s1681_s2 }
 0x20c   :  { %v1596_v43 = vpop.eup %1595  ;;  %v817_v3 = vadd.f32 1.0, %v1594_v40 }
 0x20d   :  { %v1598_v53 = vpop.eup %1597  ;;  %v818_v44 = vadd.f32 1.0, %v1596_v43 }
 0x20e   :  { %1613 = vrcp.f32 %v817_v3  ;;  %v819_v63 = vadd.f32 1.0, %v1598_v53 }
 0x20f   :  { %v1600_v60 = vpop.eup %1599  ;;  %1615 = vrcp.f32 %v818_v44 }
 0x210   :  { %v1602_v42 = vpop.eup %1601  ;;  %1617 = vrcp.f32 %v819_v63  ;;  %884 = vrot.lane.b32.xlu0 %v1600_v60, %s1681_s2 }
 0x211   :  { %v1604_v48 = vpop.eup %1603  ;;  %886 = vrot.lane.b32.xlu1 %v1602_v42, %s1681_s2 }
 0x212   :  { %v1606_v50 = vpop.eup %1605 }
 0x213   :  { %v1608_v45 = vpop.eup %1607  ;;  %v820_v1 = vadd.f32 1.0, %v1606_v50 }
 0x214   :  { %v1610_v10 = vpop.eup %1609  ;;  %v821_v59 = vadd.f32 1.0, %v1608_v45  ;;  %888 = vrot.lane.b32.xlu0 %v1604_v48, %s1681_s2 }
 0x215   :  { %v1612_v5 = vpop.eup %1611  ;;  %1619 = vrcp.f32 %v820_v1  ;;  %890 = vrot.lane.b32.xlu1 %v1610_v10, %s1681_s2 }
 0x216   :  { %1621 = vrcp.f32 %v821_v59 }
 0x218   :  { %v1614_v0 = vpop.eup %1613  ;;  %892 = vrot.lane.b32.xlu0 %v1612_v5, %s1681_s2 }
 0x219   :  { %v1616_v7 = vpop.eup %1615  ;;  %894 = vrot.lane.b32.xlu1 %v1614_v0, %s1681_s2 }
 0x21a   :  { %v1618_v49 = vpop.eup %1617 }
 0x21c   :  { %896 = vrot.lane.b32.xlu0 %v1616_v7, %s1681_s2 }
 0x21d   :  { %898 = vrot.lane.b32.xlu1 %v1618_v49, %s1681_s2 }
 0x21f   :  { %v1620_v46 = vpop.eup %1619 }
 0x220   :  { %v1622_v54 = vpop.eup %1621  ;;  %900 = vrot.lane.b32.xlu0 %v1620_v46, %s1681_s2 }
 0x221   :  { %902 = vrot.lane.b32.xlu1 %v1622_v54, %s1681_s2 }
 0x273   :  { %v873_v58 = vpop.permute.xlu0 %872 }
 0x274   :  { %1493 = vmatprep.mubr.msk.f32.mxu1 %vm904_vm6, %v873_v58  ;;  %v875_v8 = vpop.permute.xlu1 %874 }
 0x275   :  { %1494 = vmatmul.mubr.msk.f32.vlgmr.msra.gmra.mrb[0].mxu1 %vm904_vm6, %v875_v8 }
 0x278   :  { %v877_v11 = vpop.permute.xlu0 %876 }
 0x279   :  { %v879_v16 = vpop.permute.xlu1 %878  ;;  %1496 = vmatprep.mubr.msk.f32.mxu1 %vm904_vm6, %v877_v11 }
 0x27a   :  { %1497 = vmatmul.mubr.msk.f32.gmra.mrb[2].mxu1 %vm904_vm6, %v879_v16 }
 0x27c   :  { %v881_v62 = vpop.permute.xlu0 %880 }
 0x27d   :  { %v883_v13 = vpop.permute.xlu1 %882  ;;  %1499 = vmatprep.mubr.msk.f32.mxu1 %vm904_vm6, %v881_v62 }
 0x27e   :  { %1500 = vmatmul.mubr.msk.f32.gmra.mrb[4].mxu1 %vm904_vm6, %v883_v13 }
 0x282   :  { %v885_v12 = vpop.permute.xlu0 %884 }
 0x283   :  { %1502 = vmatprep.mubr.msk.f32.mxu1 %vm904_vm6, %v885_v12  ;;  %v887_v2 = vpop.permute.xlu1 %886 }
 0x284   :  { %1503 = vmatmul.mubr.msk.f32.gmra.mrb[6].mxu1 %vm904_vm6, %v887_v2 }
 0x286   :  { %v889_v55 = vpop.permute.xlu0 %888 }
 0x287   :  { %1505 = vmatprep.mubr.msk.f32.mxu1 %vm904_vm6, %v889_v55  ;;  %v891_v41 = vpop.permute.xlu1 %890 }
 0x288   :  { %1506 = vmatmul.mubr.msk.f32.gmra.mrb[8].mxu1 %vm904_vm6, %v891_v41 }
 0x28a   :  { %v893_v51 = vpop.permute.xlu0 %892 }
 0x28b   :  { %1508 = vmatprep.mubr.msk.f32.mxu1 %vm904_vm6, %v893_v51  ;;  %v895_v47 = vpop.permute.xlu1 %894 }
 0x28c   :  { %1509 = vmatmul.mubr.msk.f32.gmra.mrb[10].mxu1 %vm904_vm6, %v895_v47 }
 0x28e   :  { %v897_v14 = vpop.permute.xlu0 %896 }
 0x28f   :  { %1511 = vmatprep.mubr.msk.f32.mxu1 %vm904_vm6, %v897_v14  ;;  %v899_v22 = vpop.permute.xlu1 %898 }
 0x290   :  { %1512 = vmatmul.mubr.msk.f32.gmra.mrb[12].mxu1 %vm904_vm6, %v899_v22 }
 0x292   :  { %v901_v4 = vpop.permute.xlu0 %900 }
 0x293   :  { %1514 = vmatprep.mubr.msk.f32.mxu1 %vm904_vm6, %v901_v4  ;;  %v903_v15 = vpop.permute.xlu1 %902 }
 0x294   :  { %1515 = vmatmul.mubr.msk.f32.gmra.mrb[14].mxu1 %vm904_vm6, %v903_v15 }
 0x348   :  { %v1495_v17 = vpop.f32.mrb[0].mxu1 }
 0x349   :  { %v1083_v19 = vadd.f32 %v1495_v17, %v1767_v25  ;;  %v1003_v18 = vpop.f32.mrb[1].mxu1 }
 0x34a   :  { %v1082_v6 = vadd.f32 %v1003_v18, %v1731_v9 }
 0x34b   :  { %1100 = vadd.xlane.f32.xlu1 %v1083_v19 }
 0x34c   :  { %1098 = vadd.xlane.f32.xlu0 %v1082_v6 }
 0x34d   :  { %v1498_v20 = vpop.f32.mrb[2].mxu1 }
 0x34e   :  { %v1085_v61 = vadd.f32 %v1498_v20, %v1779_v27  ;;  %v1013_v52 = vpop.f32.mrb[3].mxu1 }
 0x34f   :  { %v1084_v57 = vadd.f32 %v1013_v52, %v1772_v26 }
 0x350   :  { %1104 = vadd.xlane.f32.xlu0 %v1085_v61 }
 0x351   :  { %v1501_v21 = vpop.f32.mrb[4].mxu1 }
 0x352   :  { %v1023_v56 = vpop.f32.mrb[5].mxu1  ;;  %v1087_v25 = vadd.f32 %v1501_v21, %v1791_v29 }
 0x353   :  { %v1086_v23 = vadd.f32 %v1023_v56, %v1784_v28 }
 0x354   :  { %1102 = vadd.xlane.f32.xlu0 %v1084_v57 }
 0x355   :  { %1106 = vadd.xlane.f32.xlu1 %v1086_v23 }
 0x357   :  { %v1504_v24 = vpop.f32.mrb[6].mxu1 }
 0x358   :  { %v1033_v40 = vpop.f32.mrb[7].mxu1  ;;  %1108 = vadd.xlane.f32.xlu0 %v1087_v25  ;;  %v1089_v43 = vadd.f32 %v1504_v24, %v1803_v31 }
 0x359   :  { %v1088_v9 = vadd.f32 %v1033_v40, %v1796_v30 }
 0x35b   :  { %1110 = vadd.xlane.f32.xlu1 %v1088_v9  ;;  %v1507_v27 = vpop.f32.mrb[8].mxu1 }
 0x35c   :  { %v1043_v3 = vpop.f32.mrb[9].mxu1  ;;  %1112 = vadd.xlane.f32.xlu0 %v1089_v43  ;;  %v2123_v28 = vadd.f32 %v1507_v27, %v1815_v33 }
 0x35d   :  { %v2120_v26 = vadd.f32 %v1043_v3, %v1808_v32 }
 0x35f   :  { %1114 = vadd.xlane.f32.xlu1 %v2120_v26  ;;  %v1510_v29 = vpop.f32.mrb[10].mxu1 }
 0x360   :  { %v1053_v53 = vpop.f32.mrb[11].mxu1  ;;  %1116 = vadd.xlane.f32.xlu0 %v2123_v28  ;;  %v2131_v31 = vadd.f32 %v1510_v29, %v1827_v35 }
 0x361   :  { %v2128_v30 = vadd.f32 %v1053_v53, %v1820_v34 }
 0x363   :  { %1118 = vadd.xlane.f32.xlu1 %v2128_v30  ;;  %v1513_v44 = vpop.f32.mrb[12].mxu1 }
 0x364   :  { %v1063_v32 = vpop.f32.mrb[13].mxu1  ;;  %1120 = vadd.xlane.f32.xlu0 %v2131_v31  ;;  %v2139_v63 = vadd.f32 %v1513_v44, %v1839_v37 }
 0x365   :  { %v2136_v33 = vadd.f32 %v1063_v32, %v1832_v36 }
 0x367   :  { %1122 = vadd.xlane.f32.xlu1 %v2136_v33  ;;  %v1516_v60 = vpop.f32.mrb[14].mxu1 }
 0x368   :  { %v1073_v34 = vpop.f32.mrb[15].mxu1  ;;  %1124 = vadd.xlane.f32.xlu0 %v2139_v63  ;;  %v2147_v42 = vadd.f32 %v1516_v60, %v1851_v39 }
 0x369   :  { %v2144_v35 = vadd.f32 %v1073_v34, %v1844_v38 }
 0x36b   :  { %1126 = vadd.xlane.f32.xlu1 %v2144_v35 }
 0x36c   :  { %1128 = vadd.xlane.f32.xlu0 %v2147_v42 }
 0x3d8   :  { %v1101_v36 = vpop.xlane.xlu1 %1100 }
 0x3d9   :  { %v1132_v48 = vmul.f32 0.0078125, %v1101_v36  ;;  %v1099_v37 = vpop.xlane.xlu0 %1098 }
 0x3da   :  { %v1131_v50 = vmul.f32 0.0078125, %v1099_v37 }
 0x3db   :  { %v2151_v45 = vsub.f32 %v1083_v19, %v1132_v48 }
 0x3dc   :  { %v2153_v1 = vsub.f32 %v1082_v6, %v1131_v50 }
 0x3dd   :  { %v1105_v10 = vpop.xlane.xlu0 %1104  ;;  %v1164_v38 = vmul.f32 %v2151_v45, %v2151_v45 }
 0x3de   :  { %v1134_v59 = vmul.f32 0.0078125, %v1105_v10  ;;  %v1163_v39 = vmul.f32 %v2153_v1, %v2153_v1 }
 0x3df   :  { %1181 = vadd.xlane.f32.xlu0 %v1164_v38 }
 0x3e0   :  { %v2159_v5 = vsub.f32 %v1085_v61, %v1134_v59  ;;  %1179 = vadd.xlane.f32.xlu1 %v1163_v39 }
 0x3e1   :  { %v1103_v0 = vpop.xlane.xlu0 %1102 }
 0x3e2   :  { %v1133_v7 = vmul.f32 0.0078125, %v1103_v0  ;;  %v1107_v49 = vpop.xlane.xlu1 %1106  ;;  %v1166_v46 = vmul.f32 %v2159_v5, %v2159_v5 }
 0x3e3   :  { %v1135_v54 = vmul.f32 0.0078125, %v1107_v49 }
 0x3e4   :  { %v2163_v58 = vsub.f32 %v1084_v57, %v1133_v7  ;;  %1185 = vadd.xlane.f32.xlu0 %v1166_v46 }
 0x3e5   :  { %v1109_v8 = vpop.xlane.xlu0 %1108  ;;  %v2165_v11 = vsub.f32 %v1086_v23, %v1135_v54 }
 0x3e6   :  { %v1136_v16 = vmul.f32 0.0078125, %v1109_v8  ;;  %v1165_v62 = vmul.f32 %v2163_v58, %v2163_v58 }
 0x3e7   :  { %v1167_v47 = vmul.f32 %v2165_v11, %v2165_v11 }
 0x3e8   :  { %v2169_v13 = vsub.f32 %v1087_v25, %v1136_v16  ;;  %v1111_v12 = vpop.xlane.xlu1 %1110  ;;  %1183 = vadd.xlane.f32.xlu1 %v1165_v62 }
 0x3e9   :  { %v1137_v2 = vmul.f32 0.0078125, %v1111_v12  ;;  %v1113_v55 = vpop.xlane.xlu0 %1112 }
 0x3ea   :  { %v1138_v41 = vmul.f32 0.0078125, %v1113_v55  ;;  %v1168_v51 = vmul.f32 %v2169_v13, %v2169_v13 }
 0x3eb   :  { %v2175_v14 = vsub.f32 %v1088_v9, %v1137_v2  ;;  %v2226_v2 = vld [vmem:[%s2296_s3] ss:$0 sm:$0xff] }
 0x3ec   :  { %v2177_v22 = vsub.f32 %v1089_v43, %v1138_v41  ;;  %v1115_v4 = vpop.xlane.xlu1 %1114  ;;  %1189 = vadd.xlane.f32.xlu0 %v1168_v51  ;;  %1187 = vadd.xlane.f32.xlu1 %v1167_v47 }
 0x3ed   :  { %v1139_v15 = vmul.f32 0.0078125, %v1115_v4  ;;  %v1117_v17 = vpop.xlane.xlu0 %1116  ;;  %v1169_v6 = vmul.f32 %v2175_v14, %v2175_v14  ;;  %v2232_v4 = vld [vmem:[%s2296_s3 + $0x1] ss:$0 sm:$0xff]  ;;  %s1682_s3 = smov [#allocation2]  }
 0x3ee   :  { %v1140_v19 = vmul.f32 0.0078125, %v1117_v17  ;;  %v1170_v18 = vmul.f32 %v2177_v22, %v2177_v22  ;;  %s1338_s8 = sshll.u32 %s1682_s3, 4  ;;  %s1339_s8 = int_to_ptr.vmem [resolvable:$true] %s1338_s8 }
 0x3ef   :  { %v2184_v20 = vsub.f32 %v2120_v26, %v1139_v15  ;;  %s1655_s9 = scalar_lea.vmem %s1339_s8, 2048  ;;  %p1660_p1 = scmp.lt.s32.totalorder %s1339_s8, %s1339_s8 }
 0x3f0   :  { %v2187_v61 = vsub.f32 %v2123_v28, %v1140_v19  ;;  %v1119_v52 = vpop.xlane.xlu1 %1118  ;;  %1193 = vadd.xlane.f32.xlu0 %v1170_v18  ;;  %1191 = vadd.xlane.f32.xlu1 %v1169_v6  ;;  %p1656_p0 = scmp.ne.s32.totalorder %s1339_s8, %s1655_s9  ;;  %p1661_p2 = scmp.lt.s32.totalorder %s1655_s9, %s1655_s9 }
 0x3f1   :  { %v1141_v21 = vmul.f32 0.0078125, %v1119_v52  ;;  %v1121_v57 = vpop.xlane.xlu0 %1120  ;;  %v1171_v25 = vmul.f32 %v2184_v20, %v2184_v20 }
 0x3f2   :  { %v1142_v56 = vmul.f32 0.0078125, %v1121_v57  ;;  %v1172_v23 = vmul.f32 %v2187_v61, %v2187_v61  ;;  %p1662_p3 = por %p1661_p2, %p1660_p1 }
 0x3f3   :  { %v2194_v24 = vsub.f32 %v2128_v30, %v1141_v21 }
 0x3f4   :  { %v2197_v40 = vsub.f32 %v2131_v31, %v1142_v56  ;;  %v1123_v9 = vpop.xlane.xlu1 %1122  ;;  %1197 = vadd.xlane.f32.xlu0 %v1172_v23  ;;  %1195 = vadd.xlane.f32.xlu1 %v1171_v25  ;;  %p1663_p4 = pnand %p1662_p3, %p1656_p0 }
 0x3f5   :  { %v1143_v43 = vmul.f32 0.0078125, %v1123_v9  ;;  %v1125_v27 = vpop.xlane.xlu0 %1124  ;;  %v1173_v28 = vmul.f32 %v2194_v24, %v2194_v24 }
 0x3f6   :  { %v1144_v3 = vmul.f32 0.0078125, %v1125_v27  ;;  %v1174_v26 = vmul.f32 %v2197_v40, %v2197_v40 }
 0x3f7   :  { %v2204_v29 = vsub.f32 %v2136_v33, %v1143_v43 }
 0x3f8   :  { %v2207_v53 = vsub.f32 %v2139_v63, %v1144_v3  ;;  %v1127_v30 = vpop.xlane.xlu1 %1126  ;;  %1201 = vadd.xlane.f32.xlu0 %v1174_v26  ;;  %1199 = vadd.xlane.f32.xlu1 %v1173_v28 }
 0x3f9   :  { %v1145_v31 = vmul.f32 0.0078125, %v1127_v30  ;;  %v1129_v44 = vpop.xlane.xlu0 %1128  ;;  %v1175_v34 = vmul.f32 %v2204_v29, %v2204_v29 }
 0x3fa   :  { %v1146_v32 = vmul.f32 0.0078125, %v1129_v44  ;;  %v1176_v60 = vmul.f32 %v2207_v53, %v2207_v53 }
 0x3fb   :  { %v2214_v36 = vsub.f32 %v2144_v35, %v1145_v31 }
 0x3fc   :  { %v2217_v33 = vsub.f32 %v2147_v42, %v1146_v32  ;;  %1205 = vadd.xlane.f32.xlu0 %v1176_v60  ;;  %1203 = vadd.xlane.f32.xlu1 %v1175_v34 }
 0x3fd   :  { %v1177_v48 = vmul.f32 %v2214_v36, %v2214_v36 }
 0x3fe   :  { %v1178_v63 = vmul.f32 %v2217_v33, %v2217_v33 }
 0x400   :  { %1209 = vadd.xlane.f32.xlu0 %v1178_v63  ;;  %1207 = vadd.xlane.f32.xlu1 %v1177_v48 }
 0x46c   :  { %v1182_v37 = vpop.xlane.xlu0 %1181 }
 0x46d   :  { %v1212_v50 = vmul.f32 0.0078125, %v1182_v37  ;;  %v1180_v10 = vpop.xlane.xlu1 %1179 }
 0x46e   :  { %v1211_v38 = vmul.f32 0.0078125, %v1180_v10 }
 0x46f   :  { %v1228_v59 = vadd.f32 1e-05, %v1212_v50 }
 0x470   :  { %v1227_v35 = vadd.f32 1e-05, %v1211_v38 }
 0x471   :  { %1623 = vrsqrt.f32 %v1228_v59  ;;  %v1186_v39 = vpop.xlane.xlu0 %1185 }
 0x472   :  { %1625 = vrsqrt.f32 %v1227_v35  ;;  %v1214_v42 = vmul.f32 0.0078125, %v1186_v39 }
 0x474   :  { %v1230_v0 = vadd.f32 1e-05, %v1214_v42 }
 0x475   :  { %v1184_v7 = vpop.xlane.xlu1 %1183 }
 0x476   :  { %1627 = vrsqrt.f32 %v1230_v0  ;;  %v1213_v49 = vmul.f32 0.0078125, %v1184_v7 }
 0x478   :  { %v1229_v46 = vadd.f32 1e-05, %v1213_v49 }
 0x479   :  { %v1190_v54 = vpop.xlane.xlu0 %1189  ;;  %v1188_v8 = vpop.xlane.xlu1 %1187 }
 0x47a   :  { %1629 = vrsqrt.f32 %v1229_v46  ;;  %v1216_v16 = vmul.f32 0.0078125, %v1190_v54  ;;  %v1215_v62 = vmul.f32 0.0078125, %v1188_v8 }
 0x47b   :  { %v1624_v12 = vpop.eup %1623 }
 0x47c   :  { %v1626_v55 = vpop.eup %1625  ;;  %v1260_v41 = vmul.f32 %v1624_v12, %v2151_v45  ;;  %v1232_v51 = vadd.f32 1e-05, %v1216_v16  ;;  %v1231_v47 = vadd.f32 1e-05, %v1215_v62 }
 0x47d   :  { %v1259_v15 = vmul.f32 %v1626_v55, %v2153_v1  ;;  %v1194_v17 = vpop.xlane.xlu0 %1193  ;;  %v1192_v19 = vpop.xlane.xlu1 %1191 }
 0x47e   :  { %v1281_v18 = vmul.f32 %v2226_v2, %v1260_v41  ;;  %1631 = vrsqrt.f32 %v1232_v51  ;;  %v1218_v6 = vmul.f32 0.0078125, %v1194_v17  ;;  %v1217_v52 = vmul.f32 0.0078125, %v1192_v19 }
 0x47f   :  { %v1280_v21 = vmul.f32 %v2226_v2, %v1259_v15  ;;  %1633 = vrsqrt.f32 %v1231_v47 }
 0x480   :  { %v1628_v45 = vpop.eup %1627  ;;  %v1302_v57 = vadd.f32 %v2232_v4, %v1281_v18  ;;  %v1234_v56 = vadd.f32 1e-05, %v1218_v6  ;;  %v1233_v23 = vadd.f32 1e-05, %v1217_v52 }
 0x481   :  { %v1301_v25 = vadd.f32 %v2232_v4, %v1280_v21  ;;  %v1262_v9 = vmul.f32 %v1628_v45, %v2159_v5  ;;  %v1198_v1 = vpop.xlane.xlu0 %1197  ;;  %v1196_v43 = vpop.xlane.xlu1 %1195 }
 0x482   :  { %1318 = vst [vmem:[#allocation2 + $0x8] sm:$0xff] %v1302_v57  ;;  %1635 = vrsqrt.f32 %v1234_v56  ;;  %v1220_v27 = vmul.f32 0.0078125, %v1198_v1  ;;  %v1219_v3 = vmul.f32 0.0078125, %v1196_v43 }
 0x483   :  { %1317 = vst [vmem:[#allocation2] sm:$0xff] %v1301_v25  ;;  %v1283_v26 = vmul.f32 %v2226_v2, %v1262_v9  ;;  %1637 = vrsqrt.f32 %v1233_v23 }
 0x484   :  { %v1630_v28 = vpop.eup %1629  ;;  %v1236_v30 = vadd.f32 1e-05, %v1220_v27  ;;  %v1235_v31 = vadd.f32 1e-05, %v1219_v3 }
 0x485   :  { %v1304_v44 = vadd.f32 %v2232_v4, %v1283_v26  ;;  %v1261_v32 = vmul.f32 %v1630_v28, %v2163_v58  ;;  %v1202_v60 = vpop.xlane.xlu0 %1201  ;;  %v1200_v34 = vpop.xlane.xlu1 %1199 }
 0x486   :  { %1639 = vrsqrt.f32 %v1236_v30  ;;  %v1222_v5 = vmul.f32 0.0078125, %v1202_v60  ;;  %v1221_v63 = vmul.f32 0.0078125, %v1200_v34 }
 0x487   :  { %1320 = vst [vmem:[#allocation2 + $0x18] sm:$0xff] %v1304_v44  ;;  %v1282_v48 = vmul.f32 %v2226_v2, %v1261_v32  ;;  %1641 = vrsqrt.f32 %v1235_v31 }
 0x488   :  { %v1632_v37 = vpop.eup %1631  ;;  %v1238_v50 = vadd.f32 1e-05, %v1222_v5  ;;  %v1237_v10 = vadd.f32 1e-05, %v1221_v63 }
 0x489   :  { %v1634_v38 = vpop.eup %1633  ;;  %v1303_v59 = vadd.f32 %v2232_v4, %v1282_v48  ;;  %v1264_v35 = vmul.f32 %v1632_v37, %v2169_v13  ;;  %v1206_v39 = vpop.xlane.xlu0 %1205 }
 0x48a   :  { %v1204_v42 = vpop.xlane.xlu1 %1203  ;;  %v1263_v58 = vmul.f32 %v1634_v38, %v2165_v11  ;;  %1643 = vrsqrt.f32 %v1238_v50  ;;  %v1224_v0 = vmul.f32 0.0078125, %v1206_v39 }
 0x48b   :  { %v1223_v7 = vmul.f32 0.0078125, %v1204_v42  ;;  %1319 = vst [vmem:[#allocation2 + $0x10] sm:$0xff] %v1303_v59  ;;  %v1285_v49 = vmul.f32 %v2226_v2, %v1264_v35  ;;  %1645 = vrsqrt.f32 %v1237_v10 }
 0x48c   :  { %v1636_v46 = vpop.eup %1635  ;;  %v1284_v54 = vmul.f32 %v2226_v2, %v1263_v58  ;;  %v1240_v8 = vadd.f32 1e-05, %v1224_v0 }
 0x48d   :  { %v1239_v16 = vadd.f32 1e-05, %v1223_v7  ;;  %v1638_v62 = vpop.eup %1637  ;;  %v1306_v12 = vadd.f32 %v2232_v4, %v1285_v49  ;;  %v1266_v13 = vmul.f32 %v1636_v46, %v2177_v22  ;;  %v1210_v55 = vpop.xlane.xlu0 %1209 }
 0x48e   :  { %v1208_v41 = vpop.xlane.xlu1 %1207  ;;  %v1305_v11 = vadd.f32 %v2232_v4, %v1284_v54  ;;  %v1265_v51 = vmul.f32 %v1638_v62, %v2175_v14  ;;  %1647 = vrsqrt.f32 %v1240_v8  ;;  %v1226_v47 = vmul.f32 0.0078125, %v1210_v55 }
 0x48f   :  { %1322 = vst [vmem:[#allocation2 + $0x28] sm:$0xff] %v1306_v12  ;;  %v1287_v15 = vmul.f32 %v2226_v2, %v1266_v13  ;;  %1649 = vrsqrt.f32 %v1239_v16  ;;  %v1225_v17 = vmul.f32 0.0078125, %v1208_v41 }
 0x490   :  { %v1640_v19 = vpop.eup %1639  ;;  %1321 = vst [vmem:[#allocation2 + $0x20] sm:$0xff] %v1305_v11  ;;  %v1286_v18 = vmul.f32 %v2226_v2, %v1265_v51  ;;  %v1242_v6 = vadd.f32 1e-05, %v1226_v47 }
 0x491   :  { %v1642_v52 = vpop.eup %1641  ;;  %v1308_v22 = vadd.f32 %v2232_v4, %v1287_v15  ;;  %v1268_v21 = vmul.f32 %v1640_v19, %v2187_v61  ;;  %v1241_v45 = vadd.f32 1e-05, %v1225_v17 }
 0x492   :  { %v1307_v14 = vadd.f32 %v2232_v4, %v1286_v18  ;;  %v1267_v57 = vmul.f32 %v1642_v52, %v2184_v20  ;;  %1651 = vrsqrt.f32 %v1242_v6 }
 0x493   :  { %1324 = vst [vmem:[#allocation2 + $0x38] sm:$0xff] %v1308_v22  ;;  %v1289_v56 = vmul.f32 %v2226_v2, %v1268_v21  ;;  %1653 = vrsqrt.f32 %v1241_v45 }
 0x494   :  { %v1644_v23 = vpop.eup %1643  ;;  %1323 = vst [vmem:[#allocation2 + $0x30] sm:$0xff] %v1307_v14  ;;  %v1288_v25 = vmul.f32 %v2226_v2, %v1267_v57 }
 0x495   :  { %v1646_v9 = vpop.eup %1645  ;;  %v1310_v1 = vadd.f32 %v2232_v4, %v1289_v56  ;;  %v1270_v43 = vmul.f32 %v1644_v23, %v2197_v40 }
 0x496   :  { %v1309_v61 = vadd.f32 %v2232_v4, %v1288_v25  ;;  %v1269_v27 = vmul.f32 %v1646_v9, %v2194_v24 }
 0x497   :  { %1326 = vst [vmem:[#allocation2 + $0x48] sm:$0xff] %v1310_v1  ;;  %v1291_v20 = vmul.f32 %v2226_v2, %v1270_v43 }
 0x498   :  { %v1648_v3 = vpop.eup %1647  ;;  %1325 = vst [vmem:[#allocation2 + $0x40] sm:$0xff] %v1309_v61  ;;  %v1290_v26 = vmul.f32 %v2226_v2, %v1269_v27 }
 0x499   :  { %v1650_v28 = vpop.eup %1649  ;;  %v1312_v30 = vadd.f32 %v2232_v4, %v1291_v20  ;;  %v1272_v31 = vmul.f32 %v1648_v3, %v2207_v53 }
 0x49a   :  { %v1311_v44 = vadd.f32 %v2232_v4, %v1290_v26  ;;  %v1271_v40 = vmul.f32 %v1650_v28, %v2204_v29 }
 0x49b   :  { %1328 = vst [vmem:[#allocation2 + $0x58] sm:$0xff] %v1312_v30  ;;  %v1293_v32 = vmul.f32 %v2226_v2, %v1272_v31 }
 0x49c   :  { %v1652_v24 = vpop.eup %1651  ;;  %1327 = vst [vmem:[#allocation2 + $0x50] sm:$0xff] %v1311_v44  ;;  %v1292_v60 = vmul.f32 %v2226_v2, %v1271_v40 }
 0x49d   :  { %v1654_v34 = vpop.eup %1653  ;;  %v1314_v5 = vadd.f32 %v2232_v4, %v1293_v32  ;;  %v1274_v63 = vmul.f32 %v1652_v24, %v2217_v33 }
 0x49e   :  { %v1313_v48 = vadd.f32 %v2232_v4, %v1292_v60  ;;  %v1273_v53 = vmul.f32 %v1654_v34, %v2214_v36 }
 0x49f   :  { %1330 = vst [vmem:[#allocation2 + $0x68] sm:$0xff] %v1314_v5  ;;  %v1295_v37 = vmul.f32 %v2226_v2, %v1274_v63 }
 0x4a0   :  { %1329 = vst [vmem:[#allocation2 + $0x60] sm:$0xff] %v1313_v48  ;;  %v1294_v29 = vmul.f32 %v2226_v2, %v1273_v53 }
 0x4a1   :  { %v1316_v50 = vadd.f32 %v2232_v4, %v1295_v37 }
 0x4a2   :  { %v1315_v10 = vadd.f32 %v2232_v4, %v1294_v29 }
 0x4a3   :  { %1332 = vst [vmem:[#allocation2 + $0x78] sm:$0xff] %v1316_v50 }
 0x4a4   :  { %1331 = vst [vmem:[#allocation2 + $0x70] sm:$0xff] %v1315_v10 }
 0x4a5   :  { %1666 = shalt.err (!%p1663_p4)
}
 0x4a6   :  { %s1667_s12 = scalar_lea.hbm %s2297_s4, 2048 }
 0x4a7   :  { %p1668_p5 = scmp.ne.s32.totalorder %s2297_s4, %s1667_s12  ;;  %p1671_p6 = scmp.lt.u32.totalorder %s1667_s12, %s2297_s4 }
 0x4a9   :  { %p1673_p7 = pnand %p1671_p6, %p1668_p5 }
 0x4ab   :  { %1676 = shalt.err (!%p1673_p7)
}
 0x4ac   :  { %s1683_s17 = smov 128   ;;  %s1684_s18 = smov 8  }
 0x4ad   :  { %1344 = dma.vmem_to_hbm [thread:$0]  %s1339_s8, 2048, %s2297_s4, [#allocation3], %s1683_s17, %s1683_s17, %s1684_s18  }
 0x4ae   :  { %1677 = dma.done.wait [#allocation3], 2048  }
 0x4af   :  { %1678 = vsyncadd [#allocation3], 4294965248 }
 0x4b0   :  { %1348 = vsyncpa [#allocation3], 1 }

</bundles_post_ra>
